<compile_context>
chip_gen: v7x
topology: tpu7x:2x2x1
jax: 0.10.0
libtpu: 0.0.40
codegen_flags: <defaults>
</compile_context>

<pallas_src>
import jax
import jax.numpy as jnp
from jax.experimental import pallas as pl
from jax.experimental.pallas import tpu as pltpu


def _pool_fc_kernel(x_ref, w_ref, b_ref, o_ref):
    # x_ref: (TB, C, HW) NCHW-flattened features for TB batch rows
    # w_ref: (C, E) fc weight   b_ref: (1, E) fc bias   o_ref: (TB, E)
    hw = x_ref.shape[-1]
    # GlobalAvgPool2d == mean over H*W: f32 sum over the (lane) HW axis, then
    # a single scalar multiply by 1/HW instead of a per-element divide.
    pooled = jnp.sum(x_ref[...].astype(jnp.float32), axis=-1) * (1.0 / hw)  # (TB, C)
    # fc: feed the MXU at the weight's native dtype, accumulate in f32.
    out = jnp.dot(pooled.astype(w_ref.dtype), w_ref[...],
                  preferred_element_type=jnp.float32)
    out = out + b_ref[...].astype(jnp.float32)
    o_ref[...] = out.astype(o_ref.dtype)


def image_model_head(x_nchw, weight, bias, *, block_b=None,
                     max_block_bytes=4 * 1024 * 1024):
    """Fused GlobalAvgPool2d + fc (Linear) head of ImageModelBase.

    x_nchw: (B, C, H, W) feature maps (NCHW, as produced by the torch backbone)
    weight: (C, E) fc weight (input-major, i.e. torch Linear weight transposed)
    bias:   (E,)   fc bias
    returns (B, E)
    """
    B, C, H, W = x_nchw.shape
    HW = H * W
    E = weight.shape[1]
    dt_size = jnp.dtype(x_nchw.dtype).itemsize

    if block_b is None:
        # Largest batch block whose input tile stays under max_block_bytes
        # (the pipeline double-buffers it), rounded to a multiple of 8 for
        # sublane-dense output stores, and not absurdly larger than B.
        tb = max(1, max_block_bytes // (HW * C * dt_size))
        tb = max(8, (tb // 8) * 8)
        tb = min(tb, max(8, pl.cdiv(B, 8) * 8))
    else:
        tb = block_b
    # Pad the batch so the grid divides exactly and output stores are unmasked.
    Bp = pl.cdiv(B, tb) * tb

    # Free reshape on a row-major NCHW array: no data movement, no extra HBM pass.
    x = x_nchw.reshape(B, C, HW)
    if Bp != B:
        x = jnp.pad(x, ((0, Bp - B), (0, 0), (0, 0)))

    bias2d = bias.reshape(1, E)
    out_dtype = jnp.result_type(x_nchw.dtype, weight.dtype)

    out = pl.pallas_call(
        _pool_fc_kernel,
        out_shape=jax.ShapeDtypeStruct((Bp, E), out_dtype),
        grid_spec=pltpu.PrefetchScalarGridSpec(
            num_scalar_prefetch=0,
            grid=(Bp // tb,),
            in_specs=[
                pl.BlockSpec((tb, C, HW), lambda i: (i, 0, 0)),  # streamed features
                pl.BlockSpec((C, E), lambda i: (0, 0)),          # resident fc weight
                pl.BlockSpec((1, E), lambda i: (0, 0)),          # resident fc bias
            ],
            out_specs=pl.BlockSpec((tb, E), lambda i: (i, 0)),
        ),
        compiler_params=pltpu.CompilerParams(
            dimension_semantics=("parallel",)),   # shards across TCs on v7x
    )(x, weight, bias2d)
    return out[:B]


if __name__ == "__main__":
    # Small, self-consistent shapes:
    #   batch=2, base_network_embedding_size (feature channels) C=32,
    #   spatial 8x8 feature map, opt.embed_dim E=32.
    B, C, H, W, E = 2, 32, 8, 8, 32

    key = jax.random.PRNGKey(0)
    kx, kw, kb = jax.random.split(key, 3)

    # Synthetic backbone feature maps (NCHW), stand-in for the external trunk.
    x = jax.random.normal(kx, (B, C, H, W), dtype=jnp.float32)

    # Deterministic fc params, mimicking torch.nn.Linear init: U(-1/sqrt(C), 1/sqrt(C)).
    bound = 1.0 / jnp.sqrt(jnp.float32(C))
    w = jax.random.uniform(kw, (C, E), minval=-bound, maxval=bound, dtype=jnp.float32)
    b = jax.random.uniform(kb, (E,), minval=-bound, maxval=bound, dtype=jnp.float32)

    out = image_model_head(x, w, b)
    out = jax.block_until_ready(out)

    # Pure-JAX reference of GlobalAvgPool2d + Linear for correctness.
    ref = jnp.mean(x, axis=(2, 3)) @ w + b
    assert out.shape == (B, E)
    assert jnp.allclose(out, ref, atol=1e-5, rtol=1e-5)

    print("KERNEL_OK")
</pallas_src>

<mosaic_0001>
module attributes {stable_mosaic.version = 11 : i64} {
  func.func @_pool_fc_kernel(%arg0: i32, %arg1: memref<8x32x64xf32, #tpu.memory_space<vmem>>, %arg2: memref<32x32xf32, #tpu.memory_space<vmem>>, %arg3: memref<1x32xf32, #tpu.memory_space<vmem>>, %arg4: memref<8x32xf32, #tpu.memory_space<vmem>>) attributes {dimension_semantics = [#tpu.dimension_semantics<parallel>], iteration_bounds = array<i64: 1>, scalar_prefetch = 0 : i64, scratch_operands = 0 : i64, tpu.core_type = #tpu.core_type<tc>, window_params = [{transform_indices = @transform_0, window_bounds = array<i64: 8, 32, 64>}, {pipeline_mode = #tpu.pipeline_mode<synchronous>, transform_indices = @transform_1, window_bounds = array<i64: 32, 32>}, {pipeline_mode = #tpu.pipeline_mode<synchronous>, transform_indices = @transform_2, window_bounds = array<i64: 1, 32>}, {transform_indices = @transform_3, window_bounds = array<i64: 8, 32>}]} {
    %c0 = arith.constant 0 : index
    %c0_0 = arith.constant 0 : index
    %c0_1 = arith.constant 0 : index
    %0 = vector.load %arg1[%c0, %c0_0, %c0_1] : memref<8x32x64xf32, #tpu.memory_space<vmem>>, vector<8x32x64xf32>
    %cst = arith.constant dense<0.000000e+00> : vector<8x32xf32>
    %1 = vector.multi_reduction <add>, %0, %cst [2] : vector<8x32x64xf32> to vector<8x32xf32>
    %cst_2 = arith.constant 1.562500e-02 : f32
    %2 = vector.broadcast %cst_2 : f32 to vector<8x32xf32>
    %3 = arith.mulf %1, %2 : vector<8x32xf32>
    %c0_3 = arith.constant 0 : index
    %c0_4 = arith.constant 0 : index
    %4 = vector.load %arg2[%c0_3, %c0_4] : memref<32x32xf32, #tpu.memory_space<vmem>>, vector<32x32xf32>
    %cst_5 = arith.constant dense<0.000000e+00> : vector<8x32xf32>
    %5 = tpu.matmul %3, %4, %cst_5 {dimension_numbers = #tpu.dot_dimension_numbers<[1], [0], [0], [1], [0, 0, 1, 1], [], []>} : vector<8x32xf32>, vector<32x32xf32>, vector<8x32xf32> -> vector<8x32xf32>
    %c0_6 = arith.constant 0 : index
    %c0_7 = arith.constant 0 : index
    %6 = vector.load %arg3[%c0_6, %c0_7] : memref<1x32xf32, #tpu.memory_space<vmem>>, vector<1x32xf32>
    %7 = vector.broadcast %6 : vector<1x32xf32> to vector<8x32xf32>
    %8 = arith.addf %5, %7 : vector<8x32xf32>
    %c0_8 = arith.constant 0 : index
    %c0_9 = arith.constant 0 : index
    %9 = vector.load %arg4[%c0_8, %c0_9] : memref<8x32xf32, #tpu.memory_space<vmem>>, vector<8x32xf32>
    tpu.vector_store %arg4[%c0_8, %c0_9], %8 {strides = array<i32>} : memref<8x32xf32, #tpu.memory_space<vmem>>, vector<8x32xf32>,
    return
  }
  func.func @transform_0(%arg0: i32) -> (i32, i32, i32) {
    %c0_i32 = arith.constant 0 : i32
    %c0_i32_0 = arith.constant 0 : i32
    %c0_i32_1 = arith.constant 0 : i32
    return %arg0, %c0_i32, %c0_i32_0 : i32, i32, i32
  }
  func.func @transform_1(%arg0: i32) -> (i32, i32) {
    %c0_i32 = arith.constant 0 : i32
    %c0_i32_0 = arith.constant 0 : i32
    %c0_i32_1 = arith.constant 0 : i32
    return %c0_i32, %c0_i32_0 : i32, i32
  }
  func.func @transform_2(%arg0: i32) -> (i32, i32) {
    %c0_i32 = arith.constant 0 : i32
    %c0_i32_0 = arith.constant 0 : i32
    %c0_i32_1 = arith.constant 0 : i32
    return %c0_i32, %c0_i32_0 : i32, i32
  }
  func.func @transform_3(%arg0: i32) -> (i32, i32) {
    %c0_i32 = arith.constant 0 : i32
    %c0_i32_0 = arith.constant 0 : i32
    return %arg0, %c0_i32 : i32, i32
  }
}

</mosaic_0001>

<bundles_post_ra>
// kernel: tpu_custom_call.1
= control target key start
LH: loop header
LB: loop body
LE: loop exit
PB: predicated region body
PF: predicated region fallthrough
CT: control target
= control target key end

     0   :  { %8 = vsyncpa [#allocation3], 0  ;;  %s790_s0 = inlined_call_operand.hbm [shape: f32[8,32,64], index: 0, kind: input, shape index: {}]   ;;  %s791_s1 = inlined_call_operand.hbm [shape: f32[32,32], index: 1, kind: input, shape index: {}]   ;;  %s792_s2 = inlined_call_operand.vmem [shape: f32[1,32], index: 2, kind: input, shape index: {}]   ;;  %s793_s3 = inlined_call_operand.hbm [shape: f32[8,32], index: 3, kind: output, shape index: {}]  }
   0x1   :  { %9 = vsyncpa [#allocation6], 0 }
   0x2   :  { %10 = vsyncpa [#allocation4], 0  ;;  %s615_s12 = smov [#allocation2]   ;;  %s543_s16 = scalar_lea.hbm %s790_s0, 4096 }
   0x3   :  { %s16_s13 = sshll.u32 %s615_s12, 4  ;;  %p544_p0 = scmp.ne.s32.totalorder %s790_s0, %s543_s16  ;;  %s17_s13 = int_to_ptr.vmem [resolvable:$true] %s16_s13 }
   0x4   :  { %p547_p1 = scmp.lt.u32.totalorder %s543_s16, %s790_s0 }
   0x6   :  { %p549_p2 = pnand %p547_p1, %p544_p0 }
   0x8   :  { %552 = shalt.err (!%p549_p2)
}
   0x9   :  { %s553_s21 = scalar_lea.vmem %s17_s13, 4096  ;;  %p558_p4 = scmp.lt.s32.totalorder %s17_s13, %s17_s13 }
   0xa   :  { %p554_p3 = scmp.ne.s32.totalorder %s17_s13, %s553_s21  ;;  %p559_p5 = scmp.lt.s32.totalorder %s553_s21, %s553_s21 }
   0xc   :  { %p560_p6 = por %p559_p5, %p558_p4 }
   0xe   :  { %p561_p7 = pnand %p560_p6, %p554_p3 }
  0x10   :  { %564 = shalt.err (!%p561_p7)
}
  0x11   :  { %s616_s22 = smov 128   ;;  %s617_s23 = smov 8  }
  0x12   :  { %22 = dma.hbm_to_vmem [thread:$0]  %s790_s0, 4096, %s17_s13, [#allocation3], %s616_s22, %s616_s22, %s617_s23  }
  0x13   :  { %s618_s26 = smov [#allocation5]   ;;  %s565_s30 = scalar_lea.hbm %s791_s1, 512 }
  0x14   :  { %s28_s27 = sshll.u32 %s618_s26, 4  ;;  %p566_p8 = scmp.ne.s32.totalorder %s791_s1, %s565_s30  ;;  %s29_s27 = int_to_ptr.vmem [resolvable:$true] %s28_s27 }
  0x15   :  { %p569_p9 = scmp.lt.u32.totalorder %s565_s30, %s791_s1 }
  0x17   :  { %p571_p10 = pnand %p569_p9, %p566_p8 }
  0x19   :  { %574 = shalt.err (!%p571_p10)
}
  0x1a   :  { %s575_s8 = scalar_lea.vmem %s29_s27, 512  ;;  %p580_p12 = scmp.lt.s32.totalorder %s29_s27, %s29_s27 }
  0x1b   :  { %p576_p11 = scmp.ne.s32.totalorder %s29_s27, %s575_s8  ;;  %p581_p13 = scmp.lt.s32.totalorder %s575_s8, %s575_s8 }
  0x1d   :  { %p582_p0 = por %p581_p13, %p580_p12 }
  0x1f   :  { %p583_p1 = pnand %p582_p0, %p576_p11 }
  0x21   :  { %586 = shalt.err (!%p583_p1)
}
  0x22   :  { %34 = dma.hbm_to_vmem [thread:$0]  %s791_s1, 512, %s29_s27, [#allocation6], %s616_s22, %s616_s22, %s617_s23  }
  0x23   :  { %609 = dma.done.wait [#allocation3], 4096  }
  0x24   :  { %610 = vsyncadd [#allocation3], 4294963200 }
  0x25   :  { %611 = dma.done.wait [#allocation6], 512  }
  0x26   :  { %612 = vsyncadd [#allocation6], 4294966784  ;;  %vm75_vm0 = vcmask 523264   ;;  %v47_v0 = vld [vmem:[#allocation2 + $0x20] sm:$0xff]  ;;  %v48_v2 = vld [vmem:[#allocation2 + $0x28] sm:$0xff]  ;;  %vm620_vm1 = vmmov 0  }
  0x27   :  { %v43_v1 = vld [vmem:[#allocation2] sm:$0xff]  ;;  %v88_v3 = vsel %vm75_vm0, %v47_v0, 0.0  ;;  %v44_v5 = vld [vmem:[#allocation2 + $0x8] sm:$0xff]  ;;  %v91_v6 = vsel %vm75_vm0, %v48_v2, 0.0  ;;  %v49_v8 = vld [vmem:[#allocation2 + $0x30] sm:$0xff]  ;;  %vm258_vm2 = vcmask 130112  }
  0x28   :  { %v76_v4 = vsel %vm75_vm0, %v43_v1, 0.0  ;;  %89 = vadd.xlane.f32.xlu1 %v88_v3  ;;  %v79_v7 = vsel %vm75_vm0, %v44_v5, 0.0  ;;  %v45_v9 = vld [vmem:[#allocation2 + $0x10] sm:$0xff]  ;;  %v94_v10 = vsel %vm75_vm0, %v49_v8, 0.0  ;;  %v52_v12 = vld [vmem:[#allocation2 + $0x48] sm:$0xff]  ;;  %v51_v13 = vld [vmem:[#allocation2 + $0x40] sm:$0xff] }
  0x29   :  { %77 = vadd.xlane.f32.xlu0 %v76_v4  ;;  %v82_v11 = vsel %vm75_vm0, %v45_v9, 0.0  ;;  %v103_v14 = vsel %vm75_vm0, %v52_v12, 0.0  ;;  %v100_v15 = vsel %vm75_vm0, %v51_v13, 0.0  ;;  %v50_v16 = vld [vmem:[#allocation2 + $0x38] sm:$0xff]  ;;  %v55_v20 = vld [vmem:[#allocation2 + $0x60] sm:$0xff]  ;;  %v53_v21 = vld [vmem:[#allocation2 + $0x50] sm:$0xff] }
  0x2a   :  { %v46_v17 = vld [vmem:[#allocation2 + $0x18] sm:$0xff]  ;;  %v97_v18 = vsel %vm75_vm0, %v50_v16, 0.0  ;;  %v112_v22 = vsel %vm75_vm0, %v55_v20, 0.0  ;;  %v106_v23 = vsel %vm75_vm0, %v53_v21, 0.0  ;;  %v56_v25 = vld [vmem:[#allocation2 + $0x68] sm:$0xff]  ;;  %v59_v28 = vld [vmem:[#allocation2 + $0x80] sm:$0xff] }
  0x2b   :  { %v85_v19 = vsel %vm75_vm0, %v46_v17, 0.0  ;;  %v54_v24 = vld [vmem:[#allocation2 + $0x58] sm:$0xff]  ;;  %v115_v27 = vsel %vm75_vm0, %v56_v25, 0.0  ;;  %v57_v29 = vld [vmem:[#allocation2 + $0x70] sm:$0xff]  ;;  %v124_v30 = vsel %vm75_vm0, %v59_v28, 0.0  ;;  %v60_v33 = vld [vmem:[#allocation2 + $0x88] sm:$0xff] }
  0x2c   :  { %92 = vadd.xlane.f32.xlu1 %v91_v6  ;;  %v109_v26 = vsel %vm75_vm0, %v54_v24, 0.0  ;;  %v118_v31 = vsel %vm75_vm0, %v57_v29, 0.0  ;;  %v58_v32 = vld [vmem:[#allocation2 + $0x78] sm:$0xff]  ;;  %v127_v35 = vsel %vm75_vm0, %v60_v33, 0.0  ;;  %v63_v36 = vld [vmem:[#allocation2 + $0xa0] sm:$0xff]  ;;  %v61_v37 = vld [vmem:[#allocation2 + $0x90] sm:$0xff] }
  0x2d   :  { %80 = vadd.xlane.f32.xlu0 %v79_v7  ;;  %v121_v34 = vsel %vm75_vm0, %v58_v32, 0.0  ;;  %v136_v38 = vsel %vm75_vm0, %v63_v36, 0.0  ;;  %v130_v39 = vsel %vm75_vm0, %v61_v37, 0.0  ;;  %v62_v40 = vld [vmem:[#allocation2 + $0x98] sm:$0xff]  ;;  %v64_v41 = vld [vmem:[#allocation2 + $0xa8] sm:$0xff]  ;;  %v67_v44 = vld [vmem:[#allocation2 + $0xc0] sm:$0xff] }
  0x2e   :  { %v133_v42 = vsel %vm75_vm0, %v62_v40, 0.0  ;;  %v139_v43 = vsel %vm75_vm0, %v64_v41, 0.0  ;;  %v65_v45 = vld [vmem:[#allocation2 + $0xb0] sm:$0xff]  ;;  %v148_v46 = vsel %vm75_vm0, %v67_v44, 0.0  ;;  %v66_v48 = vld [vmem:[#allocation2 + $0xb8] sm:$0xff]  ;;  %v68_v49 = vld [vmem:[#allocation2 + $0xc8] sm:$0xff] }
  0x2f   :  { %v142_v47 = vsel %vm75_vm0, %v65_v45, 0.0  ;;  %v145_v50 = vsel %vm75_vm0, %v66_v48, 0.0  ;;  %v151_v51 = vsel %vm75_vm0, %v68_v49, 0.0  ;;  %v71_v52 = vld [vmem:[#allocation2 + $0xe0] sm:$0xff]  ;;  %v69_v53 = vld [vmem:[#allocation2 + $0xd0] sm:$0xff]  ;;  %v70_v56 = vld [vmem:[#allocation2 + $0xd8] sm:$0xff] }
  0x30   :  { %95 = vadd.xlane.f32.xlu1 %v94_v10  ;;  %v160_v54 = vsel %vm75_vm0, %v71_v52, 0.0  ;;  %v154_v55 = vsel %vm75_vm0, %v69_v53, 0.0  ;;  %v72_v57 = vld [vmem:[#allocation2 + $0xe8] sm:$0xff]  ;;  %v157_v58 = vsel %vm75_vm0, %v70_v56, 0.0  ;;  %v73_v60 = vld [vmem:[#allocation2 + $0xf0] sm:$0xff]  ;;  %v74_v61 = vld [vmem:[#allocation2 + $0xf8] sm:$0xff] }
  0x31   :  { %83 = vadd.xlane.f32.xlu0 %v82_v11  ;;  %v163_v59 = vsel %vm75_vm0, %v72_v57, 0.0  ;;  %v166_v62 = vsel %vm75_vm0, %v73_v60, 0.0  ;;  %v169_v63 = vsel %vm75_vm0, %v74_v61, 0.0  ;;  %v204_v0 = vld [vmem:[#allocation5] sm:$0xff]  ;;  %v205_v1 = vld [vmem:[#allocation5 + $0x8] sm:$0xff]  ;;  %v619_v3 = vmov 0.0|0.0  }
  0x32   :  { %v530_v2 = vpack.c.bf16 %v205_v1, %v204_v0  ;;  %529 = vmatprep.subr.bf16.mxu0 %v619_v3  ;;  %v206_v4 = vld [vmem:[#allocation5 + $0x10] sm:$0xff]  ;;  %v207_v5 = vld [vmem:[#allocation5 + $0x18] sm:$0xff]  ;;  %v621_v7 = vmov 0.0   ;;  %vm265_vm3 = vcmask 195712   ;;  %vm272_vm4 = vcmask 261312   ;;  %s622_s11 = smov [#allocation7]  }
  0x33   :  { %v533_v6 = vpack.c.bf16 %v207_v5, %v206_v4  ;;  %526 = vmatprep.mubr.msk.f32.mxu0 %vm620_vm1, %v621_v7  ;;  %vm407_vm5 = vcmask 1041409   ;;  %vm409_vm6 = vcmask 1042434   ;;  %vm411_vm7 = vcmask 1043459   ;;  %s501_s12 = sshll.u32 %s622_s11, 4  ;;  %s502_s12 = int_to_ptr.vmem [resolvable:$true] %s501_s12 }
  0x34   :  { %104 = vadd.xlane.f32.xlu1 %v103_v14  ;;  %531 = vmatpush3.bf16.msra.mxu0 %v530_v2  ;;  %vm413_vm8 = vcmask 1044484   ;;  %vm415_vm9 = vcmask 1045509   ;;  %vm417_vm10 = vcmask 1046534   ;;  %vm419_vm11 = vcmask 1047559   ;;  %s587_s13 = scalar_lea.vmem %s502_s12, 128  ;;  %p592_p3 = scmp.lt.s32.totalorder %s502_s12, %s502_s12 }
  0x35   :  { %101 = vadd.xlane.f32.xlu0 %v100_v15  ;;  %532 = vmatprep.subr.bf16.mxu0 %v619_v3  ;;  %vm421_vm12 = vcmask 261120   ;;  %p588_p2 = scmp.ne.s32.totalorder %s502_s12, %s587_s13  ;;  %p593_p4 = scmp.lt.s32.totalorder %s587_s13, %s587_s13 }
  0x37   :  { %p594_p5 = por %p593_p4, %p592_p3 }
  0x38   :  { %98 = vadd.xlane.f32.xlu1 %v97_v18  ;;  %534 = vmatpush3.bf16.msra.mxu0 %v533_v6 }
  0x39   :  { %86 = vadd.xlane.f32.xlu0 %v85_v19  ;;  %p595_p6 = pnand %p594_p5, %p588_p2 }
  0x3c   :  { %113 = vadd.xlane.f32.xlu1 %v112_v22  ;;  %v247_v22 = vlaneseq }
  0x3d   :  { %107 = vadd.xlane.f32.xlu0 %v106_v23 }
  0x3e   :  { %v248_v25 = vand.u32 127, %v247_v22 }
  0x40   :  { %110 = vadd.xlane.f32.xlu1 %v109_v26  ;;  %v250_v26 = vshrl.u32 %v247_v22, 7  ;;  %v253_v29 = vadd.s32 4294967288, %v248_v25 }
  0x41   :  { %116 = vadd.xlane.f32.xlu0 %v115_v27 }
  0x42   :  { %v701_v32 = vsub.s32 %v248_v25, %v250_v26  ;;  %v705_v36 = vsub.s32 %v253_v29, %v250_v26 }
  0x44   :  { %125 = vadd.xlane.f32.xlu1 %v124_v30  ;;  %v260_v30 = vadd.s32 4294967280, %v248_v25 }
  0x45   :  { %119 = vadd.xlane.f32.xlu0 %v118_v31  ;;  %v267_v31 = vadd.s32 4294967272, %v248_v25 }
  0x48   :  { %122 = vadd.xlane.f32.xlu1 %v121_v34 }
  0x49   :  { %128 = vadd.xlane.f32.xlu0 %v127_v35 }
  0x4c   :  { %137 = vadd.xlane.f32.xlu1 %v136_v38 }
  0x4d   :  { %131 = vadd.xlane.f32.xlu0 %v130_v39  ;;  %v707_v39 = vsub.s32 %v260_v30, %v250_v26 }
  0x50   :  { %134 = vadd.xlane.f32.xlu1 %v133_v42 }
  0x51   :  { %140 = vadd.xlane.f32.xlu0 %v139_v43  ;;  %v709_v43 = vsub.s32 %v267_v31, %v250_v26 }
  0x54   :  { %149 = vadd.xlane.f32.xlu1 %v148_v46 }
  0x55   :  { %143 = vadd.xlane.f32.xlu0 %v142_v47 }
  0x58   :  { %146 = vadd.xlane.f32.xlu1 %v145_v50 }
  0x59   :  { %152 = vadd.xlane.f32.xlu0 %v151_v51 }
  0x5c   :  { %161 = vadd.xlane.f32.xlu1 %v160_v54 }
  0x5d   :  { %155 = vadd.xlane.f32.xlu0 %v154_v55 }
  0x60   :  { %158 = vadd.xlane.f32.xlu1 %v157_v58 }
  0x61   :  { %164 = vadd.xlane.f32.xlu0 %v163_v59 }
  0x64   :  { %170 = vadd.xlane.f32.xlu1 %v169_v63 }
  0x65   :  { %167 = vadd.xlane.f32.xlu0 %v166_v62 }
  0xb5   :  { %v90_v8 = vpop.xlane.xlu1 %89 }
  0xb6   :  { %v78_v9 = vpop.xlane.xlu0 %77  ;;  %v176_v35 = vmul.f32 0.015625, %v90_v8 }
  0xb7   :  { %v172_v42 = vmul.f32 0.015625, %v78_v9 }
  0xb8   :  { %v277_v48 = vrot.slane %v176_v35, %v701_v32 }
  0xb9   :  { %v93_v10 = vpop.xlane.xlu1 %92  ;;  %v252_v55 = vrot.slane %v172_v42, %v701_v32 }
  0xba   :  { %v81_v11 = vpop.xlane.xlu0 %80  ;;  %v177_v37 = vmul.f32 0.015625, %v93_v10 }
  0xbb   :  { %v173_v38 = vmul.f32 0.015625, %v81_v11 }
  0xbc   :  { %v281_v49 = vrot.slane %v177_v37, %v705_v36 }
  0xbd   :  { %v96_v12 = vpop.xlane.xlu1 %95  ;;  %v257_v50 = vrot.slane %v173_v38, %v705_v36 }
  0xbe   :  { %v84_v13 = vpop.xlane.xlu0 %83  ;;  %v178_v40 = vmul.f32 0.015625, %v96_v12  ;;  %v282_v61 = vsel %vm258_vm2, %v281_v49, %v277_v48 }
  0xbf   :  { %v174_v41 = vmul.f32 0.015625, %v84_v13  ;;  %v259_v62 = vsel %vm258_vm2, %v257_v50, %v252_v55 }
  0xc0   :  { %v286_v51 = vrot.slane %v178_v40, %v707_v39 }
  0xc1   :  { %v105_v14 = vpop.xlane.xlu1 %104  ;;  %v264_v52 = vrot.slane %v174_v41, %v707_v39 }
  0xc2   :  { %v102_v15 = vpop.xlane.xlu0 %101  ;;  %v181_v53 = vmul.f32 0.015625, %v105_v14  ;;  %v287_v0 = vsel %vm265_vm3, %v286_v51, %v282_v61 }
  0xc3   :  { %v180_v54 = vmul.f32 0.015625, %v102_v15  ;;  %v266_v1 = vsel %vm265_vm3, %v264_v52, %v259_v62 }
  0xc4   :  { %v300_v2 = vrot.slane %v181_v53, %v705_v36 }
  0xc5   :  { %v99_v16 = vpop.xlane.xlu1 %98  ;;  %v296_v3 = vrot.slane %v180_v54, %v701_v32 }
  0xc6   :  { %v87_v17 = vpop.xlane.xlu0 %86  ;;  %v179_v44 = vmul.f32 0.015625, %v99_v16 }
  0xc7   :  { %v175_v45 = vmul.f32 0.015625, %v87_v17  ;;  %v301_v13 = vsel %vm258_vm2, %v300_v2, %v296_v3 }
  0xc8   :  { %v291_v56 = vrot.slane %v179_v44, %v709_v43 }
  0xc9   :  { %v114_v18 = vpop.xlane.xlu1 %113  ;;  %v271_v57 = vrot.slane %v175_v45, %v709_v43 }
  0xca   :  { %v108_v19 = vpop.xlane.xlu0 %107  ;;  %v292_v4 = vsel %vm272_vm4, %v291_v56, %v287_v0  ;;  %v184_v11 = vmul.f32 0.015625, %v114_v18 }
  0xcb   :  { %v182_v58 = vmul.f32 0.015625, %v108_v19  ;;  %v273_v5 = vsel %vm272_vm4, %v271_v57, %v266_v1 }
  0xcc   :  { %v408_v14 = vsel %vm407_vm5, %v292_v4, %v273_v5  ;;  %v315_v29 = vrot.slane %v184_v11, %v701_v32 }
  0xcd   :  { %v111_v20 = vpop.xlane.xlu1 %110  ;;  %v305_v6 = vrot.slane %v182_v58, %v707_v39 }
  0xce   :  { %v117_v21 = vpop.xlane.xlu0 %116  ;;  %v183_v63 = vmul.f32 0.015625, %v111_v20 }
  0xcf   :  { %v185_v7 = vmul.f32 0.015625, %v117_v21  ;;  %v306_v16 = vsel %vm265_vm3, %v305_v6, %v301_v13 }
  0xd0   :  { %v310_v12 = vrot.slane %v183_v63, %v709_v43 }
  0xd1   :  { %v126_v23 = vpop.xlane.xlu1 %125  ;;  %v319_v17 = vrot.slane %v185_v7, %v705_v36 }
  0xd2   :  { %v699_v24 = vpop.xlane.xlu0 %119  ;;  %v188_v15 = vmul.f32 0.015625, %v126_v23  ;;  %v311_v23 = vsel %vm272_vm4, %v310_v12, %v306_v16 }
  0xd3   :  { %v186_v19 = vmul.f32 0.015625, %v699_v24  ;;  %v410_v6 = vsel %vm409_vm6, %v311_v23, %v408_v14 }
  0xd4   :  { %v334_v35 = vrot.slane %v188_v15, %v701_v32 }
  0xd5   :  { %v123_v27 = vpop.xlane.xlu1 %122  ;;  %v324_v38 = vrot.slane %v186_v19, %v707_v39 }
  0xd6   :  { %v129_v28 = vpop.xlane.xlu0 %128  ;;  %v187_v21 = vmul.f32 0.015625, %v123_v27  ;;  %v320_v27 = vsel %vm258_vm2, %v319_v17, %v315_v29 }
  0xd7   :  { %v189_v8 = vmul.f32 0.015625, %v129_v28  ;;  %v325_v56 = vsel %vm265_vm3, %v324_v38, %v320_v27 }
  0xd8   :  { %v329_v42 = vrot.slane %v187_v21, %v709_v43 }
  0xd9   :  { %v703_v33 = vpop.xlane.xlu1 %137  ;;  %v338_v22 = vrot.slane %v189_v8, %v705_v36 }
  0xda   :  { %v132_v34 = vpop.xlane.xlu0 %131  ;;  %v192_v24 = vmul.f32 0.015625, %v703_v33 }
  0xdb   :  { %v190_v20 = vmul.f32 0.015625, %v132_v34  ;;  %v339_v44 = vsel %vm258_vm2, %v338_v22, %v334_v35 }
  0xdc   :  { %v353_v52 = vrot.slane %v192_v24, %v701_v32 }
  0xdd   :  { %v135_v46 = vpop.xlane.xlu1 %134  ;;  %v343_v40 = vrot.slane %v190_v20, %v707_v39 }
  0xde   :  { %v141_v47 = vpop.xlane.xlu0 %140  ;;  %v191_v18 = vmul.f32 0.015625, %v135_v46 }
  0xdf   :  { %v193_v25 = vmul.f32 0.015625, %v141_v47  ;;  %v344_v57 = vsel %vm265_vm3, %v343_v40, %v339_v44 }
  0xe0   :  { %v348_v45 = vrot.slane %v191_v18, %v709_v43 }
  0xe1   :  { %v150_v59 = vpop.xlane.xlu1 %149  ;;  %v357_v46 = vrot.slane %v193_v25, %v705_v36 }
  0xe2   :  { %v144_v60 = vpop.xlane.xlu0 %143  ;;  %v196_v41 = vmul.f32 0.015625, %v150_v59  ;;  %v349_v61 = vsel %vm272_vm4, %v348_v45, %v344_v57 }
  0xe3   :  { %v194_v30 = vmul.f32 0.015625, %v144_v60  ;;  %v330_v60 = vsel %vm272_vm4, %v329_v42, %v325_v56  ;;  %v358_v62 = vsel %vm258_vm2, %v357_v46, %v353_v52 }
  0xe4   :  { %v372_v58 = vrot.slane %v196_v41, %v701_v32 }
  0xe5   :  { %v147_v9 = vpop.xlane.xlu1 %146  ;;  %v362_v48 = vrot.slane %v194_v30, %v707_v39 }
  0xe6   :  { %v153_v10 = vpop.xlane.xlu0 %152  ;;  %v195_v34 = vmul.f32 0.015625, %v147_v9 }
  0xe7   :  { %v197_v31 = vmul.f32 0.015625, %v153_v10  ;;  %v363_v2 = vsel %vm265_vm3, %v362_v48, %v358_v62  ;;  %v412_v10 = vsel %vm411_vm7, %v330_v60, %v410_v6 }
  0xe8   :  { %v367_v53 = vrot.slane %v195_v34, %v709_v43  ;;  %v414_v13 = vsel %vm413_vm8, %v349_v61, %v412_v10 }
  0xe9   :  { %v162_v26 = vpop.xlane.xlu1 %161  ;;  %v376_v49 = vrot.slane %v197_v31, %v705_v36 }
  0xea   :  { %v156_v28 = vpop.xlane.xlu0 %155  ;;  %v200_v54 = vmul.f32 0.015625, %v162_v26  ;;  %v368_v7 = vsel %vm272_vm4, %v367_v53, %v363_v2 }
  0xeb   :  { %v198_v37 = vmul.f32 0.015625, %v156_v28  ;;  %v377_v3 = vsel %vm258_vm2, %v376_v49, %v372_v58  ;;  %v416_v16 = vsel %vm415_vm9, %v368_v7, %v414_v13 }
  0xec   :  { %v391_v8 = vrot.slane %v200_v54, %v701_v32 }
  0xed   :  { %v159_v33 = vpop.xlane.xlu1 %158  ;;  %v381_v55 = vrot.slane %v198_v37, %v707_v39 }
  0xee   :  { %v165_v47 = vpop.xlane.xlu0 %164  ;;  %v199_v50 = vmul.f32 0.015625, %v159_v33 }
  0xef   :  { %v201_v51 = vmul.f32 0.015625, %v165_v47  ;;  %v382_v9 = vsel %vm265_vm3, %v381_v55, %v377_v3 }
  0xf0   :  { %v386_v59 = vrot.slane %v199_v50, %v709_v43 }
  0xf1   :  { %v395_v63 = vrot.slane %v201_v51, %v705_v36  ;;  %v171_v1 = vpop.xlane.xlu1 %170 }
  0xf2   :  { %v168_v0 = vpop.xlane.xlu0 %167  ;;  %v203_v5 = vmul.f32 0.015625, %v171_v1  ;;  %v387_v36 = vsel %vm272_vm4, %v386_v59, %v382_v9 }
  0xf3   :  { %v202_v4 = vmul.f32 0.015625, %v168_v0  ;;  %v396_v15 = vsel %vm258_vm2, %v395_v63, %v391_v8  ;;  %v418_v17 = vsel %vm417_vm10, %v387_v36, %v416_v16 }
  0xf4   :  { %v405_v12 = vrot.slane %v203_v5, %v709_v43 }
  0xf5   :  { %v400_v11 = vrot.slane %v202_v4, %v707_v39  ;;  %v511_v39 = vld [vmem:[%s792_s2] ss:$0 sm:$0xff] }
  0xf7   :  { %v401_v14 = vsel %vm265_vm3, %v400_v11, %v396_v15 }
  0xf8   :  { %v406_v32 = vsel %vm272_vm4, %v405_v12, %v401_v14 }
  0xf9   :  { %v420_v19 = vsel %vm419_vm11, %v406_v32, %v418_v17 }
  0xfa   :  { %527 = vmatmul.mubr.msk.f32.vlgmr.msra.gmra.mrb[0].mxu0 %vm421_vm12, %v420_v19 }
 0x1cd   :  { %v490_v43 = vpop.f32.mrb[0].mxu0 }
 0x1ce   :  { %v491_v20 = vadd.f32 %v511_v39, %v490_v43  ;;  %v528_v21 = vpop.f32.mrb[1].mxu0 }
 0x1d0   :  { %494 = vst.msk [vmem:[#allocation7] sm:$0xff] %vm421_vm12, %v491_v20 }
 0x1d1   :  { %598 = shalt.err (!%p595_p6)
}
 0x1d2   :  { %s599_s16 = scalar_lea.hbm %s793_s3, 128 }
 0x1d3   :  { %p600_p7 = scmp.ne.s32.totalorder %s793_s3, %s599_s16  ;;  %p603_p8 = scmp.lt.u32.totalorder %s599_s16, %s793_s3 }
 0x1d5   :  { %p605_p9 = pnand %p603_p8, %p600_p7 }
 0x1d7   :  { %608 = shalt.err (!%p605_p9)
}
 0x1d8   :  { %504 = dma.vmem_to_hbm [thread:$0]  %s502_s12, 128, %s793_s3, [#allocation4]  }
 0x1d9   :  { %613 = dma.done.wait [#allocation4], 128  }
 0x1da   :  { %614 = vsyncadd [#allocation4], 4294967168 }
 0x1db   :  { %508 = vsyncpa [#allocation3], 1 }
 0x1dc   :  { %509 = vsyncpa [#allocation6], 1 }
 0x1dd   :  { %510 = vsyncpa [#allocation4], 1 }

</bundles_post_ra>
